<compile_context>
chip_gen: v7x
topology: tpu7x:2x2x1
jax: 0.10.0
libtpu: 0.0.40
codegen_flags: <defaults>
</compile_context>

<pallas_src>
import jax
import jax.numpy as jnp
from jax import lax
from jax.experimental import pallas as pl
from jax.experimental.pallas import tpu as pltpu


def _cbr_kernel(x_ref, w_ref, shift_ref, o_ref):
    # x_ref:     (1, H+2, W+2, Cin)   zero-padded input plane (VMEM-resident)
    # w_ref:     (9*Cin, Cout_pad)    3x3 taps flattened, BN scale pre-folded
    # shift_ref: (1, Cout_pad)        fused conv-bias + BN shift
    # o_ref:     (1, TH, W, Cout_pad) one output row band (lane-dense Cout)
    _, TH, OW, CP = o_ref.shape
    CIN = x_ref.shape[3]

    band = pl.program_id(1)
    row0 = band * TH                       # top padded row of this band
    if TH % 8 == 0:
        row0 = pl.multiple_of(row0, 8)

    # Band + 1-row halo on each side (spatial padding already applied).
    x_band = x_ref[0, pl.ds(row0, TH + 2), :, :]       # (TH+2, W+2, Cin)

    # im2col: 9 shifted (TH, W, Cin) patches -> one (TH*W, 9*Cin) slab.
    # dy slices are on a non-tiled (leading) dim; dx shifts are value-level
    # slices the compiler lowers to sublane shifts (no hidden DMA copies).
    patches = [x_band[dy:dy + TH, dx:dx + OW, :]
               for dy in range(3) for dx in range(3)]
    slab = jnp.concatenate(patches, axis=-1).reshape(TH * OW, 9 * CIN)

    # Single fused MXU matmul (K = 9*Cin), f32 accumulation.  BN scale is
    # already folded into w_ref, so the epilogue is just add-shift + ReLU.
    acc = jnp.dot(slab, w_ref[...], preferred_element_type=jnp.float32)
    y = jnp.maximum(acc + shift_ref[...], 0.0)
    o_ref[0] = y.reshape(TH, OW, CP).astype(o_ref.dtype)


def conv2d_batchnorm_relu(x_nchw, params, *, is_batchnorm=True, eps=1e-5,
                          band_rows=None):
    """conv2DBatchNormRelu.forward for the SegNet config (3x3, s=1, p=1)."""
    N, Cin, H, W = x_nchw.shape
    Cout = params["w"].shape[0]
    assert params["w"].shape == (Cout, Cin, 3, 3), params["w"].shape

    cout_pad = ((Cout + 127) // 128) * 128          # lane-dense matmul/store

    if band_rows is None:
        # Largest divisor of H up to 64 rows; size down for huge planes/VMEM.
        band_rows = next(t for t in range(min(H, 64), 0, -1) if H % t == 0)
    assert H % band_rows == 0, (H, band_rows)
    n_bands = H // band_rows

    # NCHW -> NHWC, then the conv's 1-px zero pad is done once here (cheap
    # glue) so the kernel never zeroes a scratch border.
    x = jnp.transpose(x_nchw, (0, 2, 3, 1)).astype(jnp.float32)
    x_pad = jnp.pad(x, ((0, 0), (1, 1), (1, 1), (0, 0)))

    # Fold conv bias + BatchNorm (inference) into per-channel scale/shift;
    # the scale is then folded straight into the weight columns so the kernel
    # epilogue is a single add + ReLU.
    bias = params.get("b")
    bias = (jnp.zeros((Cout,), jnp.float32) if bias is None
            else bias.astype(jnp.float32))
    if is_batchnorm:
        inv_std = 1.0 / jnp.sqrt(params["bn_var"].astype(jnp.float32) + eps)
        scale = params["bn_gamma"].astype(jnp.float32) * inv_std
        shift = (params["bn_beta"].astype(jnp.float32)
                 + (bias - params["bn_mean"].astype(jnp.float32)) * scale)
    else:
        scale = jnp.ones((Cout,), jnp.float32)
        shift = bias

    # Conv weight (Cout, Cin, 3, 3) -> single 2D tile (9*Cin, Cout_pad),
    # row order (dy*3+dx)*Cin + ci to match the kernel's im2col slab, with
    # the BN scale pre-multiplied into each output column.
    w2d = jnp.transpose(params["w"].astype(jnp.float32), (2, 3, 1, 0))
    w2d = w2d.reshape(9 * Cin, Cout) * scale[None, :]
    w2d = jnp.pad(w2d, ((0, 0), (0, cout_pad - Cout)))
    shift = jnp.pad(shift, (0, cout_pad - Cout)).reshape(1, cout_pad)

    out_nhwc = pl.pallas_call(
        _cbr_kernel,
        out_shape=jax.ShapeDtypeStruct((N, H, W, cout_pad), jnp.float32),
        grid_spec=pltpu.PrefetchScalarGridSpec(
            num_scalar_prefetch=0,
            grid=(N, n_bands),
            in_specs=[
                # Padded plane: block index ignores the band axis, so the
                # plane stays VMEM-resident across bands of the same image.
                pl.BlockSpec((1, H + 2, W + 2, Cin), lambda n, b: (n, 0, 0, 0)),
                pl.BlockSpec((9 * Cin, cout_pad), lambda n, b: (0, 0)),
                pl.BlockSpec((1, cout_pad), lambda n, b: (0, 0)),
            ],
            out_specs=pl.BlockSpec((1, band_rows, W, cout_pad),
                                   lambda n, b: (n, b, 0, 0)),
        ),
        compiler_params=pltpu.CompilerParams(
            dimension_semantics=("parallel", "parallel"),
            vmem_limit_bytes=64 * 1024 * 1024),
    )(x_pad, w2d, shift)

    # Drop the Cout padding, NHWC -> NCHW to match PyTorch.
    return jnp.transpose(out_nhwc[..., :Cout], (0, 3, 1, 2))


def _reference(x_nchw, params, is_batchnorm=True, eps=1e-5):
    """Pure-JAX reference mirroring the PyTorch forward (inference BN)."""
    y = lax.conv_general_dilated(
        x_nchw, params["w"], window_strides=(1, 1),
        padding=((1, 1), (1, 1)),
        dimension_numbers=("NCHW", "OIHW", "NCHW"))
    y = y + params["b"].reshape(1, -1, 1, 1)
    if is_batchnorm:
        inv_std = 1.0 / jnp.sqrt(params["bn_var"] + eps)
        y = ((y - params["bn_mean"].reshape(1, -1, 1, 1))
             * (params["bn_gamma"] * inv_std).reshape(1, -1, 1, 1)
             + params["bn_beta"].reshape(1, -1, 1, 1))
    return jnp.maximum(y, 0.0)


if __name__ == "__main__":
    key = jax.random.PRNGKey(0)
    N, Cin, H, W = 2, 4, 16, 16
    Cout = 8

    k1, k2, k3, k4, k5, k6, k7 = jax.random.split(key, 7)
    x = jax.random.normal(k1, (N, Cin, H, W), jnp.float32)
    params = dict(
        w=0.1 * jax.random.normal(k2, (Cout, Cin, 3, 3), jnp.float32),
        b=0.1 * jax.random.normal(k3, (Cout,), jnp.float32),
        bn_gamma=1.0 + 0.1 * jax.random.normal(k4, (Cout,), jnp.float32),
        bn_beta=0.1 * jax.random.normal(k5, (Cout,), jnp.float32),
        bn_mean=0.05 * jax.random.normal(k6, (Cout,), jnp.float32),
        bn_var=0.9 + 0.1 * jnp.abs(jax.random.normal(k7, (Cout,), jnp.float32)),
    )

    # band_rows=8 -> grid (N=2, bands=2) to exercise the row-band tiling.
    out = conv2d_batchnorm_relu(x, params, band_rows=8)
    out = jax.block_until_ready(out)

    assert out.shape == (N, Cout, H, W), out.shape
    ref = _reference(x, params)
    max_err = float(jnp.max(jnp.abs(out - ref)))
    assert max_err < 1e-3, f"mismatch vs reference: {max_err}"

    print("KERNEL_OK")
</pallas_src>

<mosaic_0001>
module attributes {stable_mosaic.version = 11 : i64} {
  func.func @_cbr_kernel(%arg0: i32, %arg1: i32, %arg2: memref<1x18x18x4xf32, #tpu.memory_space<vmem>>, %arg3: memref<36x128xf32, #tpu.memory_space<vmem>>, %arg4: memref<1x128xf32, #tpu.memory_space<vmem>>, %arg5: memref<1x8x16x128xf32, #tpu.memory_space<vmem>>) attributes {dimension_semantics = [#tpu.dimension_semantics<parallel>, #tpu.dimension_semantics<parallel>], iteration_bounds = array<i64: 2, 2>, scalar_prefetch = 0 : i64, scratch_operands = 0 : i64, tpu.core_type = #tpu.core_type<tc>, window_params = [{transform_indices = @transform_0, window_bounds = array<i64: 1, 18, 18, 4>}, {pipeline_mode = #tpu.pipeline_mode<synchronous>, transform_indices = @transform_1, window_bounds = array<i64: 36, 128>}, {pipeline_mode = #tpu.pipeline_mode<synchronous>, transform_indices = @transform_2, window_bounds = array<i64: 1, 128>}, {transform_indices = @transform_3, window_bounds = array<i64: 1, 8, 16, 128>}]} {
    %c8_i32 = arith.constant 8 : i32
    %0 = arith.muli %arg1, %c8_i32 : i32
    %1 = tpu.assume_multiple %0, 8 : i32
    %c0 = arith.constant 0 : index
    %2 = arith.index_cast %1 : i32 to index
    %c0_0 = arith.constant 0 : index
    %c0_1 = arith.constant 0 : index
    %3 = vector.load %arg2[%c0, %2, %c0_0, %c0_1] : memref<1x18x18x4xf32, #tpu.memory_space<vmem>>, vector<1x10x18x4xf32>
    %4 = vector.shape_cast %3 : vector<1x10x18x4xf32> to vector<10x18x4xf32>
    %5 = vector.extract_strided_slice %4 {offsets = [0, 0, 0], sizes = [8, 16, 4], strides = [1, 1, 1]} : vector<10x18x4xf32> to vector<8x16x4xf32>
    %6 = vector.extract_strided_slice %4 {offsets = [0, 1, 0], sizes = [8, 16, 4], strides = [1, 1, 1]} : vector<10x18x4xf32> to vector<8x16x4xf32>
    %7 = vector.extract_strided_slice %4 {offsets = [0, 2, 0], sizes = [8, 16, 4], strides = [1, 1, 1]} : vector<10x18x4xf32> to vector<8x16x4xf32>
    %8 = vector.extract_strided_slice %4 {offsets = [1, 0, 0], sizes = [8, 16, 4], strides = [1, 1, 1]} : vector<10x18x4xf32> to vector<8x16x4xf32>
    %9 = vector.extract_strided_slice %4 {offsets = [1, 1, 0], sizes = [8, 16, 4], strides = [1, 1, 1]} : vector<10x18x4xf32> to vector<8x16x4xf32>
    %10 = vector.extract_strided_slice %4 {offsets = [1, 2, 0], sizes = [8, 16, 4], strides = [1, 1, 1]} : vector<10x18x4xf32> to vector<8x16x4xf32>
    %11 = vector.extract_strided_slice %4 {offsets = [2, 0, 0], sizes = [8, 16, 4], strides = [1, 1, 1]} : vector<10x18x4xf32> to vector<8x16x4xf32>
    %12 = vector.extract_strided_slice %4 {offsets = [2, 1, 0], sizes = [8, 16, 4], strides = [1, 1, 1]} : vector<10x18x4xf32> to vector<8x16x4xf32>
    %13 = vector.extract_strided_slice %4 {offsets = [2, 2, 0], sizes = [8, 16, 4], strides = [1, 1, 1]} : vector<10x18x4xf32> to vector<8x16x4xf32>
    %14 = tpu.concatenate %5, %6, %7, %8, %9, %10, %11, %12, %13 in 2 : vector<8x16x4xf32>, vector<8x16x4xf32>, vector<8x16x4xf32>, vector<8x16x4xf32>, vector<8x16x4xf32>, vector<8x16x4xf32>, vector<8x16x4xf32>, vector<8x16x4xf32>, vector<8x16x4xf32> -> vector<8x16x36xf32>
    %15 = vector.shape_cast %14 : vector<8x16x36xf32> to vector<128x36xf32>
    %c0_2 = arith.constant 0 : index
    %c0_3 = arith.constant 0 : index
    %16 = vector.load %arg3[%c0_2, %c0_3] : memref<36x128xf32, #tpu.memory_space<vmem>>, vector<36x128xf32>
    %cst = arith.constant dense<0.000000e+00> : vector<128x128xf32>
    %17 = tpu.matmul %15, %16, %cst {dimension_numbers = #tpu.dot_dimension_numbers<[1], [0], [0], [1], [0, 0, 1, 1], [], []>} : vector<128x36xf32>, vector<36x128xf32>, vector<128x128xf32> -> vector<128x128xf32>
    %c0_4 = arith.constant 0 : index
    %c0_5 = arith.constant 0 : index
    %18 = vector.load %arg4[%c0_4, %c0_5] : memref<1x128xf32, #tpu.memory_space<vmem>>, vector<1x128xf32>
    %19 = vector.broadcast %18 : vector<1x128xf32> to vector<128x128xf32>
    %20 = arith.addf %17, %19 : vector<128x128xf32>
    %cst_6 = arith.constant 0.000000e+00 : f32
    %21 = vector.broadcast %cst_6 : f32 to vector<128x128xf32>
    %22 = arith.maximumf %20, %21 : vector<128x128xf32>
    %23 = vector.shape_cast %22 : vector<128x128xf32> to vector<8x16x128xf32>
    %c0_7 = arith.constant 0 : index
    %c0_8 = arith.constant 0 : index
    %c0_9 = arith.constant 0 : index
    %c0_10 = arith.constant 0 : index
    %24 = vector.load %arg5[%c0_7, %c0_8, %c0_9, %c0_10] : memref<1x8x16x128xf32, #tpu.memory_space<vmem>>, vector<1x8x16x128xf32>
    %25 = vector.shape_cast %24 : vector<1x8x16x128xf32> to vector<8x16x128xf32>
    %26 = vector.shape_cast %23 : vector<8x16x128xf32> to vector<1x8x16x128xf32>
    tpu.vector_store %arg5[%c0_7, %c0_8, %c0_9, %c0_10], %26 {strides = array<i32>} : memref<1x8x16x128xf32, #tpu.memory_space<vmem>>, vector<1x8x16x128xf32>,
    return
  }
  func.func @transform_0(%arg0: i32, %arg1: i32) -> (i32, i32, i32, i32) {
    %c0_i32 = arith.constant 0 : i32
    %c0_i32_0 = arith.constant 0 : i32
    %c0_i32_1 = arith.constant 0 : i32
    %c0_i32_2 = arith.constant 0 : i32
    return %arg0, %c0_i32, %c0_i32_0, %c0_i32_1 : i32, i32, i32, i32
  }
  func.func @transform_1(%arg0: i32, %arg1: i32) -> (i32, i32) {
    %c0_i32 = arith.constant 0 : i32
    %c0_i32_0 = arith.constant 0 : i32
    %c0_i32_1 = arith.constant 0 : i32
    return %c0_i32, %c0_i32_0 : i32, i32
  }
  func.func @transform_2(%arg0: i32, %arg1: i32) -> (i32, i32) {
    %c0_i32 = arith.constant 0 : i32
    %c0_i32_0 = arith.constant 0 : i32
    %c0_i32_1 = arith.constant 0 : i32
    return %c0_i32, %c0_i32_0 : i32, i32
  }
  func.func @transform_3(%arg0: i32, %arg1: i32) -> (i32, i32, i32, i32) {
    %c0_i32 = arith.constant 0 : i32
    %c0_i32_0 = arith.constant 0 : i32
    %c0_i32_1 = arith.constant 0 : i32
    return %arg0, %arg1, %c0_i32, %c0_i32_0 : i32, i32, i32, i32
  }
}

</mosaic_0001>

<bundles_post_ra>
// kernel: tpu_custom_call.1
= control target key start
LH: loop header
LB: loop body
LE: loop exit
PB: predicated region body
PF: predicated region fallthrough
CT: control target
= control target key end

     0   :  { %s2752_s0 = inlined_call_operand.hbm [shape: f32[2,18,18,4], index: 0, kind: input, shape index: {}]   ;;  %s2753_s1 = inlined_call_operand.hbm [shape: f32[36,128], index: 1, kind: input, shape index: {}]   ;;  %s2754_s2 = inlined_call_operand.hbm [shape: f32[1,128], index: 2, kind: input, shape index: {}]   ;;  %s2755_s3 = inlined_call_operand.hbm [shape: f32[2,16,16,128], index: 3, kind: output, shape index: {}]  }
   0x1   :  { %2776 = sst [smem:[#allocation25_spill]] %s2753_s1 }
   0x2   :  { %2777 = sst [smem:[#allocation26_spill]] %s2754_s2 }
   0x3   :  { %8 = vsyncpa [#allocation3], 0 }
   0x4   :  { %10 = vsyncpa [#allocation3 + $0x1], 0 }
   0x5   :  { %11 = vsyncpa [#allocation6], 0 }
   0x6   :  { %12 = vsyncpa [#allocation4], 0 }
   0x7   :  { %14 = vsyncpa [#allocation4 + $0x1], 0  ;;  %s1777_s12 = smov 0   ;;  %s1779_s13 = smov 0  }
   0x8   :  { %s1781_s14 = smov 0   ;;  %s1783_s15 = smov 0  }
   0x9   :  { %s1785_s16 = smov 0   ;;  %s1787_s17 = smov 0  }
   0xa   :  { %s1789_s18 = smov 0   ;;  %s1791_s19 = smov 0  }
   0xb   :  { %s1793_s20 = smov 0   ;;  %s1795_s21 = smov 0  }
   0xc   :  { %s1797_s22 = smov 0  }
   0xd LB: > { %2778 = sst [smem:[#allocation12_spill]] %s1700_s12  ;;  %s1283_s23 = sadd.s32 4294967295, %s1740_s22   ;;  %s1740_s22 = sphi %s1797_s22, %s20_s22   ;;  %s1736_s21 = sphi %s1795_s21, %s2830_s21   ;;  %s1732_s20 = sphi %s1793_s20, %s2821_s20   ;;  %s1728_s19 = sphi %s1791_s19, %s2829_s19   ;;  %s1724_s18 = sphi %s1789_s18, %s2820_s18   ;;  %s1720_s17 = sphi %s1787_s17, %s2828_s17   ;;  %s1716_s16 = sphi %s1785_s16, %s2827_s16   ;;  %s1712_s15 = sphi %s1783_s15, %s2826_s15   ;;  %s1708_s14 = sphi %s1781_s14, %s2825_s14   ;;  %s1704_s13 = sphi %s1779_s13, %s2824_s13   ;;  %s1700_s12 = sphi %s1777_s12, %s2823_s12  }
   0xe   : > { %2779 = sst [smem:[#allocation13_spill]] %s1732_s20  ;;  %s1284_s24 = sadd.s32 4294967294, %s1740_s22  }
   0xf   : > { %p52_p0 = scmp.ne.s32.totalorder %s1716_s16, %s1712_s15  ;;  %p1833_p1 = scmp.eq.s32.totalorder %s1283_s23, 0 }
  0x10   : > { %p119_p2 = scmp.ne.s32.totalorder %s1708_s14, %s1704_s13  ;;  %p120_p4 = scmp.eq.s32.totalorder %s1283_s23, 3 }
  0x11   : > { %s2780_s25 = scalar_select %p1833_p1, 1, 0 }
  0x12   : > { %p1842_p3 = por %p1833_p1, %p52_p0  ;;  %p125_p5 = scmp.ne.s32.totalorder %s1704_s13, %s1700_s12 }
  0x13   : > { %p126_p6 = scmp.eq.s32.totalorder %s1284_s24, 3  ;;  %p1848_p7 = por %p120_p4, %p119_p2 }
  0x14   : > { %s2781_s27 = scalar_select %p1842_p3, 1, 0 }
  0x15   : > { %s2782_s28 = scalar_select %p1848_p7, 1, 0 }
  0x16   : > { %p1285_p8 = scmp.ge.s32.totalorder %s1740_s22, 1  ;;  %p1853_p9 = por %p126_p6, %p125_p5 }
  0x17   : > { %p133_p10 = scmp.lt.s32.totalorder %s1740_s22, 5  ;;  %s1742_s4 = smov [#allocation5]  }
  0x18   : > { %s2783_s29 = scalar_select %p1853_p9, 1, 0 }
  0x19   : > { %p1858_p11 = pnand %p1285_p8, %p133_p10  ;;  %s145_s5 = sshll.u32 %s1742_s4, 4  ;;  %s146_s5 = int_to_ptr.vmem [resolvable:$true] %s145_s5 }
  0x1a   : > { %2784 = sst [smem:[#allocation14_spill]] %s2783_s29  ;;  %s1743_s7 = smov [#allocation7]  }
  0x1b   : > { %s2785_s30 = scalar_select %p1858_p11, 1, 0 }
  0x1c   : > { %p1406_p12 = pneg %p1858_p11  ;;  %s159_s8 = sshll.u32 %s1743_s7, 4  ;;  %s1870_s8 = int_to_ptr.vmem [resolvable:$true] %s159_s8 }
  0x1d   : > { %s2787_s1 = sld [smem:[#allocation25_spill]] }
  0x1e   : > { %p1866_p13 = pnand %p1406_p12, %p1833_p1 }
  0x20   : > { %p1530_p2 = pneg %p1866_p13 }
  0x23   : > { %s1528_s11 = scalar_lea.hbm %s2787_s1, 640 }
  0x24   : > { %p1529_p0 = scmp.ne.s32.totalorder %s2787_s1, %s1528_s11  ;;  %p1535_p6 = scmp.lt.u32.totalorder %s1528_s11, %s2787_s1 }
  0x26   : > { %p1531_p4 = pnand %p1530_p2, %p1529_p0 }
  0x28   : > { %p1532_p5 = pneg %p1531_p4 }
  0x2a   : > { %p1537_p8 = pnand %p1535_p6, %p1532_p5 }
  0x2c   : > { %1540 = shalt.err (!%p1537_p8)
}
  0x2d   : > { %s1541_s7 = scalar_lea.vmem %s146_s5, 640  ;;  %p1549_p7 = scmp.lt.s32.totalorder %s146_s5, %s146_s5 }
  0x2e   : > { %p1542_p10 = scmp.ne.s32.totalorder %s146_s5, %s1541_s7  ;;  %p1550_p1 = scmp.lt.s32.totalorder %s1541_s7, %s1541_s7 }
  0x30   : > { %p1544_p12 = pnand %p1542_p10, %p1530_p2  ;;  %p1551_p3 = por %p1550_p1, %p1549_p7 }
  0x32   : > { %p1545_p9 = pneg %p1544_p12 }
  0x34   : > { %p1552_p11 = pnand %p1551_p3, %p1545_p9 }
  0x36   : > { %1555 = shalt.err (!%p1552_p11)
}
  0x37   : > { %s2763_s9 = smov 128   ;;  %s2764_s10 = smov 8  }
  0x38   : > { %1409 = dma.hbm_to_vmem [thread:$0]  (!%p1866_p13), %s2787_s1, 640, %s146_s5, [#allocation6], %s2763_s9, %s2763_s9, %s2764_s10  }
  0x39   : > { %s2788_s2 = sld [smem:[#allocation26_spill]] }
  0x3f   : > { %s1556_s4 = scalar_lea.hbm %s2788_s2, 16 }
  0x40   : > { %p1557_p1 = scmp.ne.s32.totalorder %s2788_s2, %s1556_s4  ;;  %p1563_p9 = scmp.lt.u32.totalorder %s1556_s4, %s2788_s2 }
  0x42   : > { %p1559_p3 = pnand %p1557_p1, %p1530_p2 }
  0x44   : > { %p1560_p7 = pneg %p1559_p3 }
  0x46   : > { %p1565_p11 = pnand %p1563_p9, %p1560_p7 }
  0x48   : > { %1568 = shalt.err (!%p1565_p11)
}
  0x49   : > { %s1569_s5 = scalar_lea.vmem %s1870_s8, 16  ;;  %s1576_s26 = scalar_lea.vmem %s1870_s8, 32 }
  0x4a   : > { %p1570_p0 = scmp.ne.s32.totalorder %s1870_s8, %s1569_s5  ;;  %p1577_p6 = scmp.lt.s32.totalorder %s1870_s8, %s1870_s8 }
  0x4b   : > { %p1578_p8 = scmp.lt.s32.totalorder %s1576_s26, %s1569_s5 }
  0x4c   : > { %p1572_p4 = pnand %p1570_p0, %p1530_p2 }
  0x4d   : > { %p1579_p10 = por %p1578_p8, %p1577_p6 }
  0x4e   : > { %p1573_p5 = pneg %p1572_p4 }
  0x50   : > { %p1580_p12 = pnand %p1579_p10, %p1573_p5 }
  0x52   : > { %1583 = shalt.err (!%p1580_p12)
}
  0x53   : > { %1412 = dma.hbm_to_vmem [thread:$0]  (!%p1866_p13), %s2788_s2, 16, %s1870_s8, [#allocation6]  }
  0x54   : > { %s29_s11 = sadd.s32 1, %s1732_s20  ;;  %s32_s15 = sadd.s32 1, %s1736_s21 }
  0x55   : > { %p30_p2 = scmp.ge.s32.totalorder %s29_s11, 2  ;;  %s39_s6 = sadd.s32 1, %s1720_s17 }
  0x56   : > { %p46_p1 = scmp.ne.s32.totalorder %s1720_s17, %s1716_s16  ;;  %p47_p3 = scmp.eq.s32.totalorder %s1740_s22, 0 }
  0x57   : > { %s2832_s11 = smov (%p30_p2, %s29_s11), 0  ;;  %s2834_s15 = smov (!%p30_p2, %s32_s15), %s1736_s21 }
  0x58   : > { %2789 = sst [smem:[#allocation15_spill]] %s2832_s11  ;;  %p1932_p7 = por %p47_p3, %p46_p1 }
  0x59   : > { %s105_s24 = ssub.s32 %s1732_s20, %s2832_s11  ;;  %p34_p13 = scmp.ge.s32.totalorder %s2834_s15, 2 }
  0x5a   : > { %p1423_p9 = scmp.lt.s32.totalorder %s1740_s22, 4  ;;  %s170_s8 = sand.u32 1, %s1720_s17  }
  0x5b   : > { %s1392_s4 = smul.u32 6912, %s1736_s21  ;;  %s2836_s15 = smov (%p34_p13, %s2834_s15), 0 }
  0x5c   : > { %s1391_s7 = smul.u32 432, %s170_s8  ;;  %s36_s5 = ssub.s32 %s1736_s21, %s2836_s15 }
  0x5d   : > { %s1948_s29 = scalar_lea.hbm %s2752_s0, %s1392_s4  ;;  %p37_p11 = scmp.eq.s32.totalorder %s36_s5, 0 }
  0x5e   : > { %s106_s9 = sor.u32 %s105_s24, %s36_s5  ;;  %s2791_s1 = sadd.s32 1, %s1708_s14 }
  0x5f   : > { %p107_p0 = scmp.eq.s32.totalorder %s106_s9, 0  ;;  %s174_s11 = scalar_lea.vmem [#allocation2], %s1391_s7 }
  0x60   : > { %s1951_s10 = scalar_select %p37_p11, %s1720_s17, %s39_s6  }
  0x61   : > { %s1956_s2 = scalar_select %p107_p0, %s1708_s14, %s2791_s1  }
  0x62   : > { %s181_s20 = sshll.u32 %s174_s11, 4  ;;  %p1962_p4 = pnand %p1423_p9, %p1932_p7  ;;  %s1966_s20 = int_to_ptr.vmem [resolvable:$true] %s181_s20 }
  0x63   : > { %s1968_s24 = scalar_lea.sflag [#allocation3], %s170_s8  ;;  %s1584_s9 = scalar_lea.hbm %s1948_s29, 6912 }
  0x64   : > { %p1585_p5 = scmp.ne.s32.totalorder %s1948_s29, %s1584_s9  ;;  %p1586_p6 = pneg %p1962_p4 }
  0x65   : > { %s1589_s6 = scalar_lea.hbm %s2752_s0, 13824  ;;  %p1590_p12 = scmp.lt.u32.totalorder %s1948_s29, %s2752_s0 }
  0x66   : > { %p1587_p8 = pnand %p1586_p6, %p1585_p5  ;;  %p1591_p2 = scmp.lt.u32.totalorder %s1589_s6, %s1584_s9 }
  0x67   : > { %p1593_p3 = scmp.lt.u32.totalorder %s1584_s9, %s1948_s29 }
  0x68   : > { %p1588_p10 = pneg %p1587_p8  ;;  %p1592_p1 = por %p1591_p2, %p1590_p12 }
  0x6a   : > { %p1594_p7 = por %p1593_p3, %p1592_p1 }
  0x6c   : > { %p1595_p13 = pnand %p1594_p7, %p1588_p10 }
  0x6e   : > { %1598 = shalt.err (!%p1595_p13)
}
  0x6f   : > { %s1599_s8 = scalar_lea.vmem %s1966_s20, 6912  ;;  %s1746_s7 = smov [#allocation2]  }
  0x70   : > { %p1600_p9 = scmp.ne.s32.totalorder %s1966_s20, %s1599_s8  ;;  %s1604_s5 = sshll.u32 %s1746_s7, 4  ;;  %s1605_s5 = int_to_ptr.vmem [resolvable:$false] %s1604_s5 }
  0x71   : > { %s1606_s12 = scalar_lea.vmem %s1605_s5, 13824  ;;  %p1607_p5 = scmp.lt.s32.totalorder %s1966_s20, %s1605_s5 }
  0x72   : > { %p1602_p11 = pnand %p1600_p9, %p1586_p6  ;;  %p1608_p8 = scmp.lt.s32.totalorder %s1606_s12, %s1599_s8 }
  0x74   : > { %p1603_p0 = pneg %p1602_p11  ;;  %p1609_p12 = por %p1608_p8, %p1607_p5 }
  0x76   : > { %p1610_p2 = pnand %p1609_p12, %p1603_p0 }
  0x78   : > { %1613 = shalt.err (!%p1610_p2)
}
  0x79   : > { %s2793_s9 = smov 8   ;;  %s2794_s1 = smov 128  }
  0x7a   : > { %1416 = dma.hbm_to_vmem [thread:$0]  (!%p1962_p4), %s1948_s29, 6912, %s1966_s20, %s1968_s24, %s2794_s1, %s2794_s1, %s2793_s9  }
  0x7b   : > { %p2795_p6 = scmp.ne.s32.totalorder %s2785_s30, 0 }
  0x7d   : > { %193 = sbr.rel (%p2795_p6) target bundleno = 748 (0x2ec), region = 32 }
  0x84   : > { %s195_s11 = sand.u32 1, %s1716_s16   ;;  %p2796_p10 = scmp.ne.s32.totalorder %s2781_s27, 0 }
  0x85   : > { %s1393_s6 = smul.u32 432, %s195_s11  ;;  %s196_s23 = scalar_lea.sflag [#allocation3], %s195_s11 }
  0x87   : > { %s199_s4 = scalar_lea.vmem [#allocation2], %s1393_s6 }
  0x88   : > { %1687 = dma.done.wait (%p2796_p10), %s196_s23, 6912  }
  0x89   : > { %1689 = vsyncadd (%p2796_p10), %s196_s23, 4294960384  ;;  %p2797_p1 = scmp.ne.s32.totalorder %s2780_s25, 0 }
  0x8b   : > { %1691 = dma.done.wait (%p2797_p1), [#allocation6], 656  }
  0x8c   : > { %1693 = vsyncadd (%p2797_p1), [#allocation6], 4294966640  ;;  %s1295_s20 = smul.u32 192, %s1724_s18  ;;  %vm288_vm0 = vcmask 1046528   ;;  %s1747_s25 = smov 4   ;;  %vm377_vm1 = vcmask 1045504  }
  0x8d   : > { %s1748_s27 = smov 8   ;;  %s1749_s29 = smov 12   ;;  %vm977_vm2 = vcmask 1043456   ;;  %vm780_vm3 = vcmask 31744   ;;  %vm797_vm4 = vcmask 64512   ;;  %vm814_vm5 = vcmask 97280  }
  0x8e   : > { %s2011_s30 = scalar_lea.vmem %s199_s4, %s1295_s20 [#allocation2]  ;;  %s1750_s26 = smov 16   ;;  %vm831_vm6 = vcmask 130048   ;;  %vm848_vm7 = vcmask 162816   ;;  %vm865_vm8 = vcmask 195584   ;;  %vm882_vm9 = vcmask 228352  }
  0x8f   : > { %v2014_v0 = vld [vmem:[%s2011_s30 + $0x8] sm:$0xff]  ;;  %v236_v1 = vld [vmem:[%s2011_s30 + $0x10] sm:$0x3]  ;;  %v2018_v2 = vld [vmem:[%s2011_s30] sm:$0xff]  ;;  %s1751_s24 = smov 20   ;;  %s1752_s8 = smov 24  }
  0x90   : > { %v290_v3 = vrot.slane %v2014_v0, 1  ;;  %v292_v4 = vrot.slane %v236_v1, 1  ;;  %v289_v5 = vrot.slane %v2018_v2, 1  ;;  %v2023_v6 = vld [vmem:[%s2011_s30 + $0x68] sm:$0xff]  ;;  %v248_v7 = vld [vmem:[%s2011_s30 + $0x70] sm:$0x3] }
  0x91   : > { %v310_v8 = vrot.slane %v2023_v6, 1  ;;  %v312_v9 = vrot.slane %v248_v7, 1  ;;  %v2028_v10 = vld [vmem:[%s2011_s30 + $0x60] sm:$0xff]  ;;  %v399_v14 = vrot.slane %v2023_v6, 2  ;;  %v378_v15 = vrot.slane %v2018_v2, 2  ;;  %v2064_v26 = vld [vmem:[%s2011_s30 + $0x78] sm:$0xff] }
  0x92   : > { %v293_v11 = vsel %vm288_vm0, %v290_v3, %v292_v4  ;;  %v291_v12 = vsel %vm288_vm0, %v289_v5, %v290_v3  ;;  %v309_v13 = vrot.slane %v2028_v10, 1  ;;  %v398_v18 = vrot.slane %v2028_v10, 2  ;;  %v2067_v27 = vld [vmem:[%s2011_s30 + $0x18] sm:$0xff]  ;;  %v2070_v28 = vld [vmem:[%s2011_s30 + $0x80] sm:$0xff]  ;;  %v251_v36 = vld [vmem:[%s2011_s30 + $0x88] sm:$0x3] }
  0x93   : > { %331 = vrot.lane.b32.xlu1 %v293_v11, %s1747_s25  ;;  %329 = vrot.lane.b32.xlu0 %v291_v12, %s1747_s25  ;;  %v2038_v16 = vsel %vm288_vm0, %v310_v8, %v312_v9  ;;  %v379_v19 = vrot.slane %v2014_v0, 2  ;;  %v401_v22 = vrot.slane %v248_v7, 2  ;;  %v381_v23 = vrot.slane %v236_v1, 2  ;;  %v2073_v29 = vld [vmem:[%s2011_s30 + $0x20] sm:$0xff]  ;;  %v239_v37 = vld [vmem:[%s2011_s30 + $0x28] sm:$0x3] }
  0x94   : > { %v2041_v17 = vsel %vm288_vm0, %v309_v13, %v310_v8  ;;  %v2050_v20 = vsel %vm377_vm1, %v398_v18, %v399_v14  ;;  %v314_v30 = vrot.slane %v2064_v26, 1  ;;  %v315_v31 = vrot.slane %v2070_v28, 1  ;;  %v2131_v52 = vld [vmem:[%s2011_s30 + $0x90] sm:$0xff]  ;;  %v2144_v54 = vld [vmem:[%s2011_s30 + $0x98] sm:$0xff]  ;;  %s1753_s7 = smov 28   ;;  %v916_v8 = vld [vmem:[#allocation5] sm:$0xff] }
  0x95   : > { %v380_v21 = vsel %vm377_vm1, %v378_v15, %v379_v19  ;;  %v2057_v24 = vsel %vm377_vm1, %v399_v14, %v401_v22  ;;  %v382_v25 = vsel %vm377_vm1, %v379_v19, %v381_v23  ;;  %v294_v32 = vrot.slane %v2067_v27, 1  ;;  %v2134_v53 = vld [vmem:[%s2011_s30 + $0x30] sm:$0xff]  ;;  %v2147_v55 = vld [vmem:[%s2011_s30 + $0x38] sm:$0xff]  ;;  %v254_v62 = vld [vmem:[%s2011_s30 + $0xa0] sm:$0x3]  ;;  %s1754_s5 = smov 32  }
  0x96   : > { %v295_v33 = vrot.slane %v2073_v29, 1  ;;  %v2088_v34 = vsel %vm288_vm0, %v314_v30, %v315_v31  ;;  %v317_v38 = vrot.slane %v251_v36, 1  ;;  %v297_v39 = vrot.slane %v239_v37, 1  ;;  %2802 = vst [vmem:[#allocation20_spill] sm:$0xff] %v2147_v55  ;;  %v242_v63 = vld [vmem:[%s2011_s30 + $0x40] sm:$0x3] }
  0x97   : > { %347 = vrot.lane.b32.xlu1 %v2038_v16, %s1747_s25  ;;  %345 = vrot.lane.b32.xlu0 %v2041_v17, %s1747_s25  ;;  %2798 = vst [vmem:[#allocation16_spill] sm:$0xff] %v2088_v34  ;;  %v403_v40 = vrot.slane %v2064_v26, 2  ;;  %v404_v41 = vrot.slane %v2070_v28, 2  ;;  %v383_v44 = vrot.slane %v2067_v27, 2  ;;  %v384_v45 = vrot.slane %v2073_v29, 2  ;;  %v917_v9 = vld [vmem:[#allocation5 + $0x8] sm:$0xff] }
  0x98   : > { %v296_v35 = vsel %vm288_vm0, %v294_v32, %v295_v33  ;;  %v2102_v42 = vsel %vm288_vm0, %v315_v31, %v317_v38  ;;  %v298_v43 = vsel %vm288_vm0, %v295_v33, %v297_v39  ;;  %v406_v48 = vrot.slane %v251_v36, 2  ;;  %v918_v15 = vld [vmem:[#allocation5 + $0x10] sm:$0xff]  ;;  %v919_v18 = vld [vmem:[#allocation5 + $0x18] sm:$0xff]  ;;  %v920_v23 = vld [vmem:[#allocation5 + $0x20] sm:$0xf]  ;;  %s227_s12 = sand.u32 1, %s1704_s13  }
  0x99   : > { %2799 = vst [vmem:[#allocation17_spill] sm:$0xff] %v2102_v42  ;;  %v2111_v46 = vsel %vm377_vm1, %v403_v40, %v404_v41  ;;  %v385_v47 = vsel %vm377_vm1, %v383_v44, %v384_v45  ;;  %v386_v49 = vrot.slane %v239_v37, 2  ;;  %v319_v56 = vrot.slane %v2131_v52, 1  ;;  %v2202_v33 = vld [vmem:[%s2011_s30 + $0xa8] sm:$0xff]  ;;  %v2229_v44 = vld [vmem:[%s2011_s30 + $0x50] sm:$0xff]  ;;  %s1293_s9 = sshll.u32 %s227_s12, 7 }
  0x9a   : > { %2800 = vst [vmem:[#allocation18_spill] sm:$0xff] %v2111_v46  ;;  %v2124_v50 = vsel %vm377_vm1, %v404_v41, %v406_v48  ;;  %v320_v57 = vrot.slane %v2144_v54, 1  ;;  %v299_v58 = vrot.slane %v2134_v53, 1  ;;  %v300_v59 = vrot.slane %v2147_v55, 1  ;;  %2803 = vst [vmem:[#allocation21_spill] sm:$0xff] %v2202_v33  ;;  %s2648_s1 = scalar_lea.vmem [#allocation8], %s1293_s9 }
  0x9b   : > { %434 = vrot.lane.b32.xlu1 %v2050_v20, %s1748_s27  ;;  %418 = vrot.lane.b32.xlu0 %v380_v21, %s1748_s27  ;;  %2801 = vst [vmem:[#allocation19_spill] sm:$0xff] %v2124_v50  ;;  %v387_v51 = vsel %vm377_vm1, %v384_v45, %v386_v49  ;;  %v322_v1 = vrot.slane %v254_v62, 1  ;;  %v302_v3 = vrot.slane %v242_v63, 1  ;;  %v408_v4 = vrot.slane %v2131_v52, 2  ;;  %2806 = vst [vmem:[#allocation24_spill] sm:$0xff] %v2229_v44  ;;  %s1321_s11 = sshll.u32 %s1724_s18, 4 }
  0x9c   : > { %v321_v60 = vsel %vm288_vm0, %v319_v56, %v320_v57  ;;  %v301_v61 = vsel %vm288_vm0, %v299_v58, %v300_v59  ;;  %v409_v5 = vrot.slane %v2144_v54, 2  ;;  %v388_v7 = vrot.slane %v2134_v53, 2  ;;  %s1317_s6 = sshll.u32 %s1728_s19, 5  ;;  %s1175_s18 = sshll.u32 %s2648_s1, 4  ;;  %s2683_s18 = int_to_ptr.vmem [resolvable:$true] %s1175_s18 }
  0x9d   : > { %v323_v11 = vsel %vm288_vm0, %v320_v57, %v322_v1  ;;  %v303_v12 = vsel %vm288_vm0, %v300_v59, %v302_v3  ;;  %v389_v13 = vrot.slane %v2147_v55, 2  ;;  %v1377_v14 = vpack.c.bf16 %v917_v9, %v916_v8  ;;  %s1172_s23 = sadd.s32 %s1321_s11, %s1317_s6  ;;  %p2816_p3 = scmp.ne.s32.totalorder %s2782_s28, 0 }
  0x9e   : > { %v410_v19 = vsel %vm377_vm1, %v408_v4, %v409_v5  ;;  %v1381_v22 = vpack.c.bf16 %v919_v18, %v918_v15  ;;  %v391_v30 = vrot.slane %v242_v63, 2  ;;  %v324_v45 = vrot.slane %v2202_v33, 1  ;;  %s1318_s4 = sshll.u32 %s1172_s23, 7 }
  0x9f   : > { %436 = vrot.lane.b32.xlu1 %v2057_v24, %s1748_s27  ;;  %420 = vrot.lane.b32.xlu0 %v382_v25, %s1748_s27  ;;  %v390_v21 = vsel %vm377_vm1, %v388_v7, %v389_v13  ;;  %v411_v25 = vrot.slane %v254_v62, 2  ;;  %v305_v49 = vrot.slane %v2229_v44, 1  ;;  %v245_v62 = vld [vmem:[%s2011_s30 + $0x58] sm:$0x3]  ;;  %vm899_vm10 = vcmask 261120  }
  0xa0   : > { %1378 = vmatprep.subr.bf16.mxu0 %v1377_v14  ;;  %1385 = vmatprep.subr.bf16.mxu1 %v1377_v14  ;;  %v392_v32 = vsel %vm377_vm1, %v389_v13, %v391_v30  ;;  %v307_v4 = vrot.slane %v245_v62, 1  ;;  %vm928_vm11 = vcmask 293888  }
  0xa1   : > { %1380 = vmatpush3.bf16.msra.mxu0 %v1377_v14  ;;  %1388 = vmatpush3.bf16.msra.mxu1 %v1377_v14  ;;  %v412_v31 = vsel %vm377_vm1, %v409_v5, %v411_v25  ;;  %v394_v14 = vrot.slane %v2229_v44, 2 }
  0xa2   : > { %1382 = vmatprep.subr.bf16.mxu0 %v1381_v22  ;;  %1386 = vmatprep.subr.bf16.mxu1 %v1381_v22  ;;  %v308_v9 = vsel %vm288_vm0, %v305_v49, %v307_v4 }
  0xa3   : > { %484 = vrot.lane.b32.xlu1 %v2064_v26, %s1749_s29  ;;  %468 = vrot.lane.b32.xlu0 %v2067_v27, %s1749_s29 }
  0xa5   : > { %1384 = vmatpush3.bf16.msra.mxu0 %v1381_v22  ;;  %1389 = vmatpush3.bf16.msra.mxu1 %v1381_v22 }
  0xa6   : > { %1351 = vmatprep.subr.msk.mxu0 %vm977_vm2, %v920_v23  ;;  %1387 = vmatprep.subr.msk.mxu1 %vm977_vm2, %v920_v23 }
  0xa7   : > { %486 = vrot.lane.b32.xlu1 %v2070_v28, %s1749_s29  ;;  %470 = vrot.lane.b32.xlu0 %v2073_v29, %s1749_s29 }
  0xa9   : > { %1352 = vmatpush3.msk.msra.mxu0 %vm977_vm2, %v920_v23  ;;  %1390 = vmatpush3.msk.msra.mxu1 %vm977_vm2, %v920_v23 }
  0xab   : > { %538 = vrot.lane.b32.xlu1 %v2088_v34, %s1750_s26  ;;  %522 = vrot.lane.b32.xlu0 %v296_v35, %s1750_s26 }
  0xaf   : > { %349 = vrot.lane.b32.xlu1 %v2088_v34, %s1747_s25  ;;  %333 = vrot.lane.b32.xlu0 %v296_v35, %s1747_s25  ;;  %v2205_v35 = vld [vmem:[%s2011_s30 + $0x48] sm:$0xff] }
  0xb0   : > { %2804 = vst [vmem:[#allocation22_spill] sm:$0xff] %v2205_v35  ;;  %v304_v48 = vrot.slane %v2205_v35, 1  ;;  %v393_v13 = vrot.slane %v2205_v35, 2 }
  0xb2   : > { %v306_v58 = vsel %vm288_vm0, %v304_v48, %v305_v49 }
  0xb3   : > { %540 = vrot.lane.b32.xlu1 %v2102_v42, %s1750_s26  ;;  %524 = vrot.lane.b32.xlu0 %v298_v43, %s1750_s26 }
  0xb7   : > { %591 = vrot.lane.b32.xlu1 %v2111_v46, %s1751_s24  ;;  %575 = vrot.lane.b32.xlu0 %v385_v47, %s1751_s24 }
  0xbb   : > { %351 = vrot.lane.b32.xlu1 %v2102_v42, %s1747_s25  ;;  %335 = vrot.lane.b32.xlu0 %v298_v43, %s1747_s25  ;;  %v2226_v43 = vld [vmem:[%s2011_s30 + $0xb0] sm:$0xff] }
  0xbc   : > { %2805 = vst [vmem:[#allocation23_spill] sm:$0xff] %v2226_v43 }
  0xbf   : > { %438 = vrot.lane.b32.xlu1 %v2111_v46, %s1748_s27  ;;  %422 = vrot.lane.b32.xlu0 %v385_v47, %s1748_s27  ;;  %v325_v47 = vrot.slane %v2226_v43, 1 }
  0xc1   : > { %v326_v57 = vsel %vm288_vm0, %v324_v45, %v325_v47 }
  0xc3   : > { %593 = vrot.lane.b32.xlu1 %v2124_v50, %s1751_s24  ;;  %577 = vrot.lane.b32.xlu0 %v387_v51, %s1751_s24 }
  0xc7   : > { %641 = vrot.lane.b32.xlu1 %v2131_v52, %s1752_s8  ;;  %625 = vrot.lane.b32.xlu0 %v2134_v53, %s1752_s8 }
  0xcb   : > { %440 = vrot.lane.b32.xlu1 %v2124_v50, %s1748_s27  ;;  %424 = vrot.lane.b32.xlu0 %v387_v51, %s1748_s27 }
  0xcf   : > { %488 = vrot.lane.b32.xlu1 %v2131_v52, %s1749_s29  ;;  %472 = vrot.lane.b32.xlu0 %v2134_v53, %s1749_s29 }
  0xd3   : > { %643 = vrot.lane.b32.xlu1 %v2144_v54, %s1752_s8  ;;  %627 = vrot.lane.b32.xlu0 %v2147_v55, %s1752_s8 }
  0xd7   : > { %695 = vrot.lane.b32.xlu1 %v321_v60, %s1753_s7  ;;  %679 = vrot.lane.b32.xlu0 %v301_v61, %s1753_s7 }
  0xdb   : > { %490 = vrot.lane.b32.xlu1 %v2144_v54, %s1749_s29  ;;  %474 = vrot.lane.b32.xlu0 %v2147_v55, %s1749_s29 }
  0xdf   : > { %542 = vrot.lane.b32.xlu1 %v321_v60, %s1750_s26  ;;  %526 = vrot.lane.b32.xlu0 %v301_v61, %s1750_s26 }
  0xe3   : > { %697 = vrot.lane.b32.xlu1 %v323_v11, %s1753_s7  ;;  %681 = vrot.lane.b32.xlu0 %v303_v12, %s1753_s7 }
  0xe7   : > { %748 = vrot.lane.b32.xlu1 %v410_v19, %s1754_s5  ;;  %732 = vrot.lane.b32.xlu0 %v390_v21, %s1754_s5 }
  0xeb   : > { %353 = vrot.lane.b32.xlu1 %v321_v60, %s1747_s25  ;;  %337 = vrot.lane.b32.xlu0 %v301_v61, %s1747_s25  ;;  %v257_v61 = vld [vmem:[%s2011_s30 + $0xb8] sm:$0x3] }
  0xec   : > { %v327_v3 = vrot.slane %v257_v61, 1  ;;  %v416_v45 = vrot.slane %v257_v61, 2 }
  0xee   : > { %v328_v8 = vsel %vm288_vm0, %v325_v47, %v327_v3  ;;  %v396_v47 = vrot.slane %v245_v62, 2 }
  0xef   : > { %544 = vrot.lane.b32.xlu1 %v323_v11, %s1750_s26  ;;  %528 = vrot.lane.b32.xlu0 %v303_v12, %s1750_s26 }
  0xf3   : > { %595 = vrot.lane.b32.xlu1 %v410_v19, %s1751_s24  ;;  %579 = vrot.lane.b32.xlu0 %v390_v21, %s1751_s24 }
  0xf7   : > { %750 = vrot.lane.b32.xlu1 %v412_v31, %s1754_s5  ;;  %734 = vrot.lane.b32.xlu0 %v392_v32, %s1754_s5 }
  0xfb   : > { %355 = vrot.lane.b32.xlu1 %v323_v11, %s1747_s25  ;;  %339 = vrot.lane.b32.xlu0 %v303_v12, %s1747_s25  ;;  %v413_v11 = vrot.slane %v2202_v33, 2  ;;  %v414_v12 = vrot.slane %v2226_v43, 2 }
  0xff   : > { %442 = vrot.lane.b32.xlu1 %v410_v19, %s1748_s27  ;;  %426 = vrot.lane.b32.xlu0 %v390_v21, %s1748_s27  ;;  %v415_v19 = vsel %vm377_vm1, %v413_v11, %v414_v12  ;;  %v395_v21 = vsel %vm377_vm1, %v393_v13, %v394_v14 }
 0x103   : > { %597 = vrot.lane.b32.xlu1 %v412_v31, %s1751_s24  ;;  %581 = vrot.lane.b32.xlu0 %v392_v32, %s1751_s24 }
 0x105   : > { %v2207_v36 = vpop.permute.xlu1 %331  ;;  %v2209_v37 = vpop.permute.xlu0 %329 }
 0x107   : > { %645 = vrot.lane.b32.xlu1 %v2202_v33, %s1752_s8  ;;  %629 = vrot.lane.b32.xlu0 %v2205_v35, %s1752_s8 }
 0x109   : > { %v2215_v38 = vpop.permute.xlu1 %347  ;;  %v2217_v39 = vpop.permute.xlu0 %345 }
 0x10b   : > { %444 = vrot.lane.b32.xlu1 %v412_v31, %s1748_s27  ;;  %428 = vrot.lane.b32.xlu0 %v392_v32, %s1748_s27 }
 0x10d   : > { %v2221_v40 = vpop.permute.xlu1 %434  ;;  %v2223_v41 = vpop.permute.xlu0 %418 }
 0x10f   : > { %492 = vrot.lane.b32.xlu1 %v2202_v33, %s1749_s29  ;;  %476 = vrot.lane.b32.xlu0 %v2205_v35, %s1749_s29 }
 0x111   : > { %v2239_v51 = vpop.permute.xlu1 %436  ;;  %v2241_v56 = vpop.permute.xlu0 %420 }
 0x113   : > { %647 = vrot.lane.b32.xlu1 %v2226_v43, %s1752_s8  ;;  %631 = vrot.lane.b32.xlu0 %v2229_v44, %s1752_s8 }
 0x115   : > { %v2249_v59 = vpop.permute.xlu1 %484  ;;  %v2251_v60 = vpop.permute.xlu0 %468 }
 0x117   : > { %699 = vrot.lane.b32.xlu1 %v326_v57, %s1753_s7  ;;  %683 = vrot.lane.b32.xlu0 %v306_v58, %s1753_s7 }
 0x119   : > { %v2257_v63 = vpop.permute.xlu1 %486  ;;  %v2259_v1 = vpop.permute.xlu0 %470 }
 0x11b   : > { %494 = vrot.lane.b32.xlu1 %v2226_v43, %s1749_s29  ;;  %478 = vrot.lane.b32.xlu0 %v2229_v44, %s1749_s29  ;;  %v2341_v43 = vld [vmem:[%s2011_s30 + $0xc8] sm:$0xff] }
 0x11c   : > { %v518_v46 = vrot.slane %v2341_v43, 1 }
 0x11d   : > { %v2265_v5 = vpop.permute.xlu1 %538  ;;  %v2267_v7 = vpop.permute.xlu0 %522 }
 0x11f   : > { %546 = vrot.lane.b32.xlu1 %v326_v57, %s1750_s26  ;;  %530 = vrot.lane.b32.xlu0 %v306_v58, %s1750_s26 }
 0x121   : > { %v350_v15 = vpop.permute.xlu1 %349  ;;  %v334_v18 = vpop.permute.xlu0 %333 }
 0x122   : > { %v791_v35 = vsel %vm780_vm3, %v2064_v26, %v350_v15  ;;  %v783_v33 = vsel %vm780_vm3, %v2067_v27, %v334_v18 }
 0x123   : > { %701 = vrot.lane.b32.xlu1 %v328_v8, %s1753_s7  ;;  %685 = vrot.lane.b32.xlu0 %v308_v9, %s1753_s7 }
 0x125   : > { %v2281_v22 = vpop.permute.xlu1 %540  ;;  %v2283_v23 = vpop.permute.xlu0 %524 }
 0x127   : > { %752 = vrot.lane.b32.xlu1 %v415_v19, %s1754_s5  ;;  %736 = vrot.lane.b32.xlu0 %v395_v21, %s1754_s5 }
 0x129   : > { %v2287_v25 = vpop.permute.xlu1 %591  ;;  %v2289_v30 = vpop.permute.xlu0 %575 }
 0x12b   : > { %357 = vrot.lane.b32.xlu1 %v326_v57, %s1747_s25  ;;  %341 = vrot.lane.b32.xlu0 %v306_v58, %s1747_s25  ;;  %v417_v57 = vsel %vm377_vm1, %v414_v12, %v416_v45  ;;  %v397_v58 = vsel %vm377_vm1, %v394_v14, %v396_v47  ;;  %v2324_v45 = vld [vmem:[%s2011_s30 + $0xc0] sm:$0xff] }
 0x12c   : > { %v517_v50 = vrot.slane %v2324_v45, 1 }
 0x12d   : > { %v2293_v31 = vpop.permute.xlu1 %351  ;;  %v2295_v32 = vpop.permute.xlu0 %335 }
 0x12f   : > { %548 = vrot.lane.b32.xlu1 %v328_v8, %s1750_s26  ;;  %532 = vrot.lane.b32.xlu0 %v308_v9, %s1750_s26 }
 0x131   : > { %v439_v48 = vpop.permute.xlu1 %438  ;;  %v423_v49 = vpop.permute.xlu0 %422 }
 0x133   : > { %599 = vrot.lane.b32.xlu1 %v415_v19, %s1751_s24  ;;  %583 = vrot.lane.b32.xlu0 %v395_v21, %s1751_s24 }
 0x135   : > { %v2303_v3 = vpop.permute.xlu1 %593  ;;  %v2305_v4 = vpop.permute.xlu0 %577 }
 0x137   : > { %754 = vrot.lane.b32.xlu1 %v417_v57, %s1754_s5  ;;  %738 = vrot.lane.b32.xlu0 %v397_v58, %s1754_s5 }
 0x139   : > { %v2309_v61 = vpop.permute.xlu1 %641  ;;  %v2311_v62 = vpop.permute.xlu0 %625 }
 0x13b   : > { %359 = vrot.lane.b32.xlu1 %v328_v8, %s1747_s25  ;;  %343 = vrot.lane.b32.xlu0 %v308_v9, %s1747_s25  ;;  %s2690_s25 = scalar_lea.sflag [#allocation4], %s227_s12 }
 0x13d   : > { %v2315_v11 = vpop.permute.xlu1 %440  ;;  %v2317_v12 = vpop.permute.xlu0 %424 }
 0x13f   : > { %446 = vrot.lane.b32.xlu1 %v415_v19, %s1748_s27  ;;  %430 = vrot.lane.b32.xlu0 %v395_v21, %s1748_s27 }
 0x141   : > { %v489_v13 = vpop.permute.xlu1 %488  ;;  %v473_v14 = vpop.permute.xlu0 %472 }
 0x143   : > { %601 = vrot.lane.b32.xlu1 %v417_v57, %s1751_s24  ;;  %585 = vrot.lane.b32.xlu0 %v397_v58, %s1751_s24 }
 0x145   : > { %v2326_v8 = vpop.permute.xlu1 %643  ;;  %v2328_v9 = vpop.permute.xlu0 %627 }
 0x147   : > { %649 = vrot.lane.b32.xlu1 %v2324_v45, %s1752_s8  ;;  %633 = vrot.lane.b32.xlu0 %v2028_v10, %s1752_s8 }
 0x149   : > { %v696_v19 = vpop.permute.xlu1 %695  ;;  %v680_v21 = vpop.permute.xlu0 %679 }
 0x14b   : > { %448 = vrot.lane.b32.xlu1 %v417_v57, %s1748_s27  ;;  %432 = vrot.lane.b32.xlu0 %v397_v58, %s1748_s27  ;;  %v808_v57 = vsel %vm797_vm4, %v791_v35, %v439_v48  ;;  %v800_v58 = vsel %vm797_vm4, %v783_v33, %v423_v49  ;;  %v781_v33 = vsel %vm780_vm3, %v2018_v2, %v2209_v37 }
 0x14c   : > { %v825_v15 = vsel %vm814_vm5, %v808_v57, %v489_v13  ;;  %v817_v42 = vsel %vm814_vm5, %v800_v58, %v473_v14  ;;  %v789_v35 = vsel %vm780_vm3, %v2028_v10, %v2217_v39  ;;  %v519_v49 = vsel %vm288_vm0, %v517_v50, %v518_v46 }
 0x14d   : > { %v2336_v47 = vpop.permute.xlu1 %490  ;;  %v2338_v44 = vpop.permute.xlu0 %474  ;;  %v806_v48 = vsel %vm797_vm4, %v789_v35, %v2221_v40  ;;  %v571_v35 = vrot.slane %v2341_v43, 2 }
 0x14e   : > { %v823_v2 = vsel %vm814_vm5, %v806_v48, %v2249_v59 }
 0x14f   : > { %496 = vrot.lane.b32.xlu1 %v2324_v45, %s1749_s29  ;;  %480 = vrot.lane.b32.xlu0 %v2028_v10, %s1749_s29  ;;  %v840_v13 = vsel %vm831_vm6, %v823_v2, %v2265_v5 }
 0x150   : > { %v857_v50 = vsel %vm848_vm7, %v840_v13, %v2287_v25 }
 0x151   : > { %v543_v27 = vpop.permute.xlu1 %542  ;;  %v527_v18 = vpop.permute.xlu0 %526  ;;  %v874_v59 = vsel %vm865_vm8, %v857_v50, %v2309_v61 }
 0x152   : > { %v2358_v34 = vsel %vm831_vm6, %v825_v15, %v543_v27  ;;  %v2361_v55 = vsel %vm831_vm6, %v817_v42, %v527_v18  ;;  %v798_v42 = vsel %vm797_vm4, %v781_v33, %v2223_v41  ;;  %v891_v5 = vsel %vm882_vm9, %v874_v59, %v696_v19 }
 0x153   : > { %651 = vrot.lane.b32.xlu1 %v2341_v43, %s1752_s8  ;;  %635 = vrot.lane.b32.xlu0 %v2023_v6, %s1752_s8  ;;  %v815_v10 = vsel %vm814_vm5, %v798_v42, %v2251_v60  ;;  %v784_v15 = vsel %vm780_vm3, %v2073_v29, %v2295_v32  ;;  %v570_v27 = vrot.slane %v2324_v45, 2 }
 0x154   : > { %v832_v40 = vsel %vm831_vm6, %v815_v10, %v2267_v7  ;;  %v801_v33 = vsel %vm797_vm4, %v784_v15, %v2317_v12 }
 0x155   : > { %v698_v37 = vpop.permute.xlu1 %697  ;;  %v682_v39 = vpop.permute.xlu0 %681  ;;  %v849_v41 = vsel %vm848_vm7, %v832_v40, %v2289_v30  ;;  %v260_v30 = vld [vmem:[%s2011_s30 + $0xd0] sm:$0x3]  ;;  %v818_v32 = vsel %vm814_vm5, %v801_v33, %v2338_v44 }
 0x156   : > { %v866_v60 = vsel %vm865_vm8, %v849_v41, %v2311_v62  ;;  %v520_v61 = vrot.slane %v260_v30, 1 }
 0x157   : > { %703 = vrot.lane.b32.xlu1 %v519_v49, %s1753_s7  ;;  %687 = vrot.lane.b32.xlu0 %v2041_v17, %s1753_s7  ;;  %v883_v7 = vsel %vm882_vm9, %v866_v60, %v680_v21  ;;  %v792_v21 = vsel %vm780_vm3, %v2070_v28, %v2293_v31 }
 0x158   : > { %v809_v18 = vsel %vm797_vm4, %v792_v21, %v2315_v11  ;;  %v521_v31 = vsel %vm288_vm0, %v518_v46, %v520_v61  ;;  %v790_v46 = vsel %vm780_vm3, %v2023_v6, %v2215_v38 }
 0x159   : > { %v749_v25 = vpop.permute.xlu1 %748  ;;  %v733_v14 = vpop.permute.xlu0 %732  ;;  %v826_v29 = vsel %vm814_vm5, %v809_v18, %v2336_v47  ;;  %v572_v47 = vsel %vm377_vm1, %v570_v27, %v571_v35 }
 0x15a   : > { %v908_v57 = vsel %vm899_vm10, %v891_v5, %v749_v25  ;;  %v900_v58 = vsel %vm899_vm10, %v883_v7, %v733_v14  ;;  %v262_v7 = vld [vmem:[%s2011_s30 + $0xe0] sm:$0xff] }
 0x15b   : > { %498 = vrot.lane.b32.xlu1 %v2341_v43, %s1749_s29  ;;  %1365 = vmatprep.mubr.msk.f32.mxu1 %vm928_vm11, %v908_v57  ;;  %v807_v43 = vsel %vm797_vm4, %v790_v46, %v2239_v51  ;;  %v675_v14 = vrot.slane %v262_v7, 1  ;;  %v2807_v57 = vld [vmem:[#allocation20_spill] sm:$0xff] }
 0x15c   : > { %482 = vrot.lane.b32.xlu0 %v2023_v6, %s1749_s29  ;;  %1353 = vmatprep.mubr.msk.f32.mxu0 %vm928_vm11, %v900_v58  ;;  %s1614_s29 = scalar_lea.vmem %s2683_s18, 2048 }
 0x15d   : > { %v354_v62 = vpop.permute.xlu1 %353  ;;  %v338_v19 = vpop.permute.xlu0 %337  ;;  %p1615_p4 = scmp.ne.s32.totalorder %s2683_s18, %s1614_s29 }
 0x15e   : > { %v793_v13 = vsel %vm780_vm3, %v2131_v52, %v354_v62  ;;  %v261_v52 = vld [vmem:[%s2011_s30 + $0xd8] sm:$0xff] }
 0x15f   : > { %550 = vrot.lane.b32.xlu1 %v519_v49, %s1750_s26  ;;  %v674_v25 = vrot.slane %v261_v52, 1  ;;  %p1616_p7 = pnand %p1615_p4, %p2816_p3 }
 0x160   : > { %534 = vrot.lane.b32.xlu0 %v2041_v17, %s1750_s26  ;;  %v782_v17 = vsel %vm780_vm3, %v2014_v0, %v2207_v36  ;;  %v824_v0 = vsel %vm814_vm5, %v807_v43, %v2257_v63 }
 0x161   : > { %v545_v45 = vpop.permute.xlu1 %544  ;;  %v529_v48 = vpop.permute.xlu0 %528  ;;  %v799_v44 = vsel %vm797_vm4, %v782_v17, %v2241_v56  ;;  %v841_v51 = vsel %vm831_vm6, %v824_v0, %v2281_v22  ;;  %p1617_p13 = pneg %p1616_p7 }
 0x162   : > { %v2429_v11 = vsel %vm831_vm6, %v826_v29, %v545_v45  ;;  %v2432_v12 = vsel %vm831_vm6, %v818_v32, %v529_v48  ;;  %v816_v36 = vsel %vm814_vm5, %v799_v44, %v2259_v1  ;;  %v858_v42 = vsel %vm848_vm7, %v841_v51, %v2303_v3  ;;  %v2808_v29 = vld [vmem:[#allocation16_spill] sm:$0xff]  ;;  %v2809_v48 = vld [vmem:[#allocation17_spill] sm:$0xff] }
 0x163   : > { %705 = vrot.lane.b32.xlu1 %v521_v31, %s1753_s7  ;;  %v833_v56 = vsel %vm831_vm6, %v816_v36, %v2283_v23  ;;  %v875_v63 = vsel %vm865_vm8, %v858_v42, %v2326_v8  ;;  %v573_v8 = vrot.slane %v260_v30, 2 }
 0x164   : > { %689 = vrot.lane.b32.xlu0 %v2038_v16, %s1753_s7  ;;  %v850_v49 = vsel %vm848_vm7, %v833_v56, %v2305_v4  ;;  %v892_v22 = vsel %vm882_vm9, %v875_v63, %v698_v37 }
 0x165   : > { %v2452_v6 = vpop.permute.xlu1 %595  ;;  %v2454_v38 = vpop.permute.xlu0 %579  ;;  %v867_v1 = vsel %vm865_vm8, %v850_v49, %v2328_v9  ;;  %v2811_v49 = vld [vmem:[#allocation19_spill] sm:$0xff] }
 0x166   : > { %v884_v23 = vsel %vm882_vm9, %v867_v1, %v682_v39  ;;  %v574_v39 = vsel %vm377_vm1, %v571_v35, %v573_v8  ;;  %v727_v35 = vrot.slane %v261_v52, 2 }
 0x167   : > { %756 = vrot.lane.b32.xlu1 %v572_v47, %s1754_s5 }
 0x168   : > { %740 = vrot.lane.b32.xlu0 %v2050_v20, %s1754_s5 }
 0x169   : > { %v751_v2 = vpop.permute.xlu1 %750  ;;  %v735_v3 = vpop.permute.xlu0 %734 }
 0x16a   : > { %v909_v10 = vsel %vm899_vm10, %v892_v22, %v751_v2  ;;  %v901_v4 = vsel %vm899_vm10, %v884_v23, %v735_v3 }
 0x16b   : > { %552 = vrot.lane.b32.xlu1 %v521_v31, %s1750_s26  ;;  %1366 = vmatmul.mubr.msk.f32.vlgmr.msra.gmra.mrb[0].mxu1 %vm928_vm11, %v909_v10  ;;  %v728_v31 = vrot.slane %v262_v7, 2  ;;  %v859_v10 = vsel %vm848_vm7, %v2358_v34, %v2452_v6 }
 0x16c   : > { %536 = vrot.lane.b32.xlu0 %v2038_v16, %s1750_s26  ;;  %1354 = vmatmul.mubr.msk.f32.vlgmr.msra.gmra.mrb[0].mxu0 %vm928_vm11, %v901_v4  ;;  %v785_v16 = vsel %vm780_vm3, %v2134_v53, %v338_v19  ;;  %v851_v4 = vsel %vm848_vm7, %v2361_v55, %v2454_v38  ;;  %s1755_s26 = smov [#allocation8]  }
 0x16d   : > { %v356_v9 = vpop.permute.xlu1 %355  ;;  %v340_v37 = vpop.permute.xlu0 %339  ;;  %v729_v17 = vsel %vm377_vm1, %v727_v35, %v728_v31 }
 0x16e   : > { %v794_v30 = vsel %vm780_vm3, %v2144_v54, %v356_v9  ;;  %v786_v58 = vsel %vm780_vm3, %v2807_v57, %v340_v37 }
 0x16f   : > { %603 = vrot.lane.b32.xlu1 %v572_v47, %s1751_s24  ;;  %v2810_v47 = vld [vmem:[#allocation18_spill] sm:$0xff] }
 0x170   : > { %587 = vrot.lane.b32.xlu0 %v2050_v20, %s1751_s24 }
 0x171   : > { %v443_v40 = vpop.permute.xlu1 %442  ;;  %v427_v50 = vpop.permute.xlu0 %426 }
 0x172   : > { %v810_v41 = vsel %vm797_vm4, %v793_v13, %v443_v40  ;;  %v802_v59 = vsel %vm797_vm4, %v785_v16, %v427_v50 }
 0x173   : > { %758 = vrot.lane.b32.xlu1 %v574_v39, %s1754_s5 }
 0x174   : > { %742 = vrot.lane.b32.xlu0 %v2057_v24, %s1754_s5 }
 0x175   : > { %v2493_v20 = vpop.permute.xlu1 %597  ;;  %v2495_v60 = vpop.permute.xlu0 %581 }
 0x177   : > { %605 = vrot.lane.b32.xlu1 %v574_v39, %s1751_s24 }
 0x178   : > { %589 = vrot.lane.b32.xlu0 %v2057_v24, %s1751_s24  ;;  %v263_v24 = vld [vmem:[%s2011_s30 + $0xe8] sm:$0x3]  ;;  %s2680_s30 = scalar_lea.hbm %s2755_s3, %s1318_s4  ;;  %s1618_s24 = sshll.u32 %s1755_s26, 4  ;;  %s1619_s24 = int_to_ptr.vmem [resolvable:$false] %s1618_s24 }
 0x179   : > { %v646_v53 = vpop.permute.xlu1 %645  ;;  %v630_v5 = vpop.permute.xlu0 %629  ;;  %v677_v15 = vrot.slane %v263_v24, 1  ;;  %v730_v46 = vrot.slane %v263_v24, 2  ;;  %p1621_p9 = scmp.lt.s32.totalorder %s2683_s18, %s1619_s24 }
 0x17a   : > { %v876_v8 = vsel %vm865_vm8, %v859_v10, %v646_v53  ;;  %v868_v9 = vsel %vm865_vm8, %v851_v4, %v630_v5  ;;  %v860_v5 = vsel %vm848_vm7, %v2429_v11, %v2493_v20  ;;  %v2812_v20 = vld [vmem:[#allocation21_spill] sm:$0xff] }
 0x17b   : > { %653 = vrot.lane.b32.xlu1 %v261_v52, %s1752_s8  ;;  %v678_v32 = vsel %vm288_vm0, %v675_v14, %v677_v15  ;;  %v731_v0 = vsel %vm377_vm1, %v728_v31, %v730_v46 }
 0x17c   : > { %637 = vrot.lane.b32.xlu0 %v2064_v26, %s1752_s8  ;;  %v676_v26 = vsel %vm288_vm0, %v674_v25, %v675_v14 }
 0x17d   : > { %v445_v61 = vpop.permute.xlu1 %444  ;;  %v429_v62 = vpop.permute.xlu0 %428 }
 0x17e   : > { %v811_v19 = vsel %vm797_vm4, %v794_v30, %v445_v61  ;;  %v803_v21 = vsel %vm797_vm4, %v786_v58, %v429_v62 }
 0x17f   : > { %655 = vrot.lane.b32.xlu1 %v262_v7, %s1752_s8  ;;  %v852_v7 = vsel %vm848_vm7, %v2432_v12, %v2495_v60 }
 0x180   : > { %639 = vrot.lane.b32.xlu0 %v2070_v28, %s1752_s8  ;;  %s1620_s8 = scalar_lea.vmem %s1619_s24, 4096 }
 0x181   : > { %v493_v27 = vpop.permute.xlu1 %492  ;;  %v477_v54 = vpop.permute.xlu0 %476  ;;  %p1622_p11 = scmp.lt.s32.totalorder %s1620_s8, %s1614_s29 }
 0x182   : > { %v827_v18 = vsel %vm814_vm5, %v810_v41, %v493_v27  ;;  %v819_v33 = vsel %vm814_vm5, %v802_v59, %v477_v54 }
 0x183   : > { %707 = vrot.lane.b32.xlu1 %v676_v26, %s1753_s7  ;;  %p1623_p0 = por %p1622_p11, %p1621_p9 }
 0x184   : > { %691 = vrot.lane.b32.xlu0 %v2808_v29, %s1753_s7 }
 0x185   : > { %v648_v45 = vpop.permute.xlu1 %647  ;;  %v632_v28 = vpop.permute.xlu0 %631  ;;  %p1624_p5 = pnand %p1623_p0, %p1617_p13 }
 0x186   : > { %v877_v25 = vsel %vm865_vm8, %v860_v5, %v648_v45  ;;  %v869_v14 = vsel %vm865_vm8, %v852_v7, %v632_v28 }
 0x187   : > { %709 = vrot.lane.b32.xlu1 %v678_v32, %s1753_s7 }
 0x188   : > { %693 = vrot.lane.b32.xlu0 %v2809_v48, %s1753_s7 }
 0x189   : > { %v700_v43 = vpop.permute.xlu1 %699  ;;  %v684_v44 = vpop.permute.xlu0 %683 }
 0x18a   : > { %v893_v37 = vsel %vm882_vm9, %v876_v8, %v700_v43  ;;  %v885_v39 = vsel %vm882_vm9, %v868_v9, %v684_v44 }
 0x18b   : > { %760 = vrot.lane.b32.xlu1 %v729_v17, %s1754_s5 }
 0x18c   : > { %744 = vrot.lane.b32.xlu0 %v2810_v47, %s1754_s5 }
 0x18d   : > { %v495_v36 = vpop.permute.xlu1 %494  ;;  %v479_v51 = vpop.permute.xlu0 %478 }
 0x18e   : > { %v828_v56 = vsel %vm814_vm5, %v811_v19, %v495_v36  ;;  %v820_v42 = vsel %vm814_vm5, %v803_v21, %v479_v51  ;;  %v2813_v19 = vld [vmem:[#allocation22_spill] sm:$0xff] }
 0x18f   : > { %762 = vrot.lane.b32.xlu1 %v731_v0, %s1754_s5 }
 0x190   : > { %746 = vrot.lane.b32.xlu0 %v2811_v49, %s1754_s5 }
 0x191   : > { %v547_v63 = vpop.permute.xlu1 %546  ;;  %v531_v1 = vpop.permute.xlu0 %530 }
 0x192   : > { %v2536_v22 = vsel %vm831_vm6, %v827_v18, %v547_v63  ;;  %v2539_v23 = vsel %vm831_vm6, %v819_v33, %v531_v1 }
 0x195   : > { %v702_v2 = vpop.permute.xlu1 %701  ;;  %v686_v3 = vpop.permute.xlu0 %685 }
 0x196   : > { %v894_v30 = vsel %vm882_vm9, %v877_v25, %v702_v2  ;;  %v886_v57 = vsel %vm882_vm9, %v869_v14, %v686_v3 }
 0x199   : > { %v753_v13 = vpop.permute.xlu1 %752  ;;  %v737_v16 = vpop.permute.xlu0 %736 }
 0x19a   : > { %v910_v40 = vsel %vm899_vm10, %v893_v37, %v753_v13  ;;  %v902_v50 = vsel %vm899_vm10, %v885_v39, %v737_v16 }
 0x19b   : > { %1356 = vmatprep.mubr.msk.f32.mxu0 %vm928_vm11, %v902_v50  ;;  %1368 = vmatprep.mubr.msk.f32.mxu1 %vm928_vm11, %v910_v40 }
 0x19d   : > { %v358_v34 = vpop.permute.xlu1 %357  ;;  %v342_v55 = vpop.permute.xlu0 %341 }
 0x19e   : > { %v795_v60 = vsel %vm780_vm3, %v2812_v20, %v358_v34  ;;  %v787_v21 = vsel %vm780_vm3, %v2813_v19, %v342_v55 }
 0x1a1   : > { %v549_v6 = vpop.permute.xlu1 %548  ;;  %v533_v38 = vpop.permute.xlu0 %532 }
 0x1a2   : > { %v845_v41 = vsel %vm831_vm6, %v828_v56, %v549_v6  ;;  %v837_v59 = vsel %vm831_vm6, %v820_v42, %v533_v38 }
 0x1a5   : > { %v600_v52 = vpop.permute.xlu1 %599  ;;  %v584_v53 = vpop.permute.xlu0 %583 }
 0x1a6   : > { %v861_v42 = vsel %vm848_vm7, %v2536_v22, %v600_v52  ;;  %v853_v49 = vsel %vm848_vm7, %v2539_v23, %v584_v53 }
 0x1a9   : > { %v755_v58 = vpop.permute.xlu1 %754  ;;  %v739_v61 = vpop.permute.xlu0 %738 }
 0x1aa   : > { %v911_v62 = vsel %vm899_vm10, %v894_v30, %v755_v58  ;;  %v903_v24 = vsel %vm899_vm10, %v886_v57, %v739_v61 }
 0x1ab   : > { %1357 = vmatmul.mubr.msk.f32.gmra.mrb[2].mxu0 %vm928_vm11, %v903_v24  ;;  %1369 = vmatmul.mubr.msk.f32.gmra.mrb[2].mxu1 %vm928_vm11, %v911_v62 }
 0x1ad   : > { %v2571_v11 = vpop.permute.xlu1 %359  ;;  %v2573_v12 = vpop.permute.xlu0 %343 }
 0x1b1   : > { %v447_v26 = vpop.permute.xlu1 %446  ;;  %v431_v15 = vpop.permute.xlu0 %430 }
 0x1b2   : > { %v812_v27 = vsel %vm797_vm4, %v795_v60, %v447_v26  ;;  %v804_v54 = vsel %vm797_vm4, %v787_v21, %v431_v15  ;;  %v2814_v60 = vld [vmem:[#allocation23_spill] sm:$0xff]  ;;  %v2815_v15 = vld [vmem:[#allocation24_spill] sm:$0xff] }
 0x1b3   : > { %v796_v19 = vsel %vm780_vm3, %v2814_v60, %v2571_v11 }
 0x1b5   : > { %v602_v18 = vpop.permute.xlu1 %601  ;;  %v586_v33 = vpop.permute.xlu0 %585 }
 0x1b6   : > { %v862_v13 = vsel %vm848_vm7, %v845_v41, %v602_v18  ;;  %v854_v16 = vsel %vm848_vm7, %v837_v59, %v586_v33  ;;  %v788_v18 = vsel %vm780_vm3, %v2815_v15, %v2573_v12 }
 0x1b9   : > { %v650_v35 = vpop.permute.xlu1 %649  ;;  %v634_v31 = vpop.permute.xlu0 %633 }
 0x1ba   : > { %v878_v63 = vsel %vm865_vm8, %v861_v42, %v650_v35  ;;  %v870_v1 = vsel %vm865_vm8, %v853_v49, %v634_v31 }
 0x1bd   : > { %v449_v29 = vpop.permute.xlu1 %448  ;;  %v433_v32 = vpop.permute.xlu0 %432 }
 0x1be   : > { %v805_v35 = vsel %vm797_vm4, %v788_v18, %v433_v32 }
 0x1c1   : > { %v497_v45 = vpop.permute.xlu1 %496  ;;  %v481_v28 = vpop.permute.xlu0 %480 }
 0x1c2   : > { %v829_v58 = vsel %vm814_vm5, %v812_v27, %v497_v45  ;;  %v821_v62 = vsel %vm814_vm5, %v804_v54, %v481_v28  ;;  %v813_v27 = vsel %vm797_vm4, %v796_v19, %v449_v29 }
 0x1c5   : > { %v652_v48 = vpop.permute.xlu1 %651  ;;  %v636_v17 = vpop.permute.xlu0 %635 }
 0x1c6   : > { %v879_v40 = vsel %vm865_vm8, %v862_v13, %v652_v48  ;;  %v871_v50 = vsel %vm865_vm8, %v854_v16, %v636_v17 }
 0x1c9   : > { %v704_v46 = vpop.permute.xlu1 %703  ;;  %v688_v43 = vpop.permute.xlu0 %687 }
 0x1ca   : > { %v895_v2 = vsel %vm882_vm9, %v878_v63, %v704_v46  ;;  %v887_v10 = vsel %vm882_vm9, %v870_v1, %v688_v43 }
 0x1cd   : > { %v499_v44 = vpop.permute.xlu1 %498 }
 0x1ce   : > { %v483_v47 = vpop.permute.xlu0 %482  ;;  %v830_v31 = vsel %vm814_vm5, %v813_v27, %v499_v44 }
 0x1cf   : > { %v822_v48 = vsel %vm814_vm5, %v805_v35, %v483_v47 }
 0x1d1   : > { %v551_v0 = vpop.permute.xlu1 %550 }
 0x1d2   : > { %v535_v36 = vpop.permute.xlu0 %534  ;;  %v846_v24 = vsel %vm831_vm6, %v829_v58, %v551_v0 }
 0x1d3   : > { %v838_v21 = vsel %vm831_vm6, %v821_v62, %v535_v36 }
 0x1d5   : > { %v706_v51 = vpop.permute.xlu1 %705 }
 0x1d6   : > { %v690_v56 = vpop.permute.xlu0 %689  ;;  %v896_v34 = vsel %vm882_vm9, %v879_v40, %v706_v51 }
 0x1d7   : > { %v888_v6 = vsel %vm882_vm9, %v871_v50, %v690_v56 }
 0x1d9   : > { %v757_v3 = vpop.permute.xlu1 %756 }
 0x1da   : > { %v912_v4 = vsel %vm899_vm10, %v895_v2, %v757_v3  ;;  %v741_v8 = vpop.permute.xlu0 %740  ;;  %v2640_v2 = vld [vmem:[#allocation7] ss:$0 sm:$0xff] }
 0x1db   : > { %v904_v9 = vsel %vm899_vm10, %v887_v10, %v741_v8  ;;  %1371 = vmatprep.mubr.msk.f32.mxu1 %vm928_vm11, %v912_v4 }
 0x1dc   : > { %1359 = vmatprep.mubr.msk.f32.mxu0 %vm928_vm11, %v904_v9 }
 0x1dd   : > { %v553_v22 = vpop.permute.xlu1 %552 }
 0x1de   : > { %v537_v23 = vpop.permute.xlu0 %536  ;;  %v847_v17 = vsel %vm831_vm6, %v830_v31, %v553_v22 }
 0x1df   : > { %v839_v43 = vsel %vm831_vm6, %v822_v48, %v537_v23 }
 0x1e1   : > { %v604_v37 = vpop.permute.xlu1 %603 }
 0x1e2   : > { %v588_v39 = vpop.permute.xlu0 %587  ;;  %v863_v26 = vsel %vm848_vm7, %v846_v24, %v604_v37 }
 0x1e3   : > { %v855_v33 = vsel %vm848_vm7, %v838_v21, %v588_v39 }
 0x1e5   : > { %v759_v55 = vpop.permute.xlu1 %758 }
 0x1e6   : > { %v913_v38 = vsel %vm899_vm10, %v896_v34, %v759_v55  ;;  %v743_v52 = vpop.permute.xlu0 %742 }
 0x1e7   : > { %v905_v53 = vsel %vm899_vm10, %v888_v6, %v743_v52  ;;  %1372 = vmatmul.mubr.msk.f32.gmra.mrb[4].mxu1 %vm928_vm11, %v913_v38 }
 0x1e8   : > { %1360 = vmatmul.mubr.msk.f32.gmra.mrb[4].mxu0 %vm928_vm11, %v905_v53 }
 0x1e9   : > { %v606_v41 = vpop.permute.xlu1 %605 }
 0x1ea   : > { %v590_v59 = vpop.permute.xlu0 %589  ;;  %v864_v32 = vsel %vm848_vm7, %v847_v17, %v606_v41 }
 0x1eb   : > { %v856_v0 = vsel %vm848_vm7, %v839_v43, %v590_v59 }
 0x1ed   : > { %v654_v5 = vpop.permute.xlu1 %653 }
 0x1ee   : > { %v638_v7 = vpop.permute.xlu0 %637  ;;  %v880_v54 = vsel %vm865_vm8, %v863_v26, %v654_v5 }
 0x1ef   : > { %v872_v11 = vsel %vm865_vm8, %v855_v33, %v638_v7 }
 0x1f1   : > { %v656_v25 = vpop.permute.xlu1 %655 }
 0x1f2   : > { %v640_v14 = vpop.permute.xlu0 %639  ;;  %v881_v47 = vsel %vm865_vm8, %v864_v32, %v656_v25 }
 0x1f3   : > { %v873_v36 = vsel %vm865_vm8, %v856_v0, %v640_v14 }
 0x1f5   : > { %v708_v30 = vpop.permute.xlu1 %707 }
 0x1f6   : > { %v692_v57 = vpop.permute.xlu0 %691  ;;  %v897_v45 = vsel %vm882_vm9, %v880_v54, %v708_v30 }
 0x1f7   : > { %v889_v12 = vsel %vm882_vm9, %v872_v11, %v692_v57 }
 0x1f9   : > { %v710_v61 = vpop.permute.xlu1 %709 }
 0x1fa   : > { %v694_v20 = vpop.permute.xlu0 %693  ;;  %v898_v51 = vsel %vm882_vm9, %v881_v47, %v710_v61 }
 0x1fb   : > { %v890_v42 = vsel %vm882_vm9, %v873_v36, %v694_v20 }
 0x1fd   : > { %v761_v28 = vpop.permute.xlu1 %760 }
 0x1fe   : > { %v914_v29 = vsel %vm899_vm10, %v897_v45, %v761_v28  ;;  %v745_v46 = vpop.permute.xlu0 %744 }
 0x1ff   : > { %v906_v44 = vsel %vm899_vm10, %v889_v12, %v745_v46  ;;  %1374 = vmatprep.mubr.msk.f32.mxu1 %vm928_vm11, %v914_v29 }
 0x200   : > { %1362 = vmatprep.mubr.msk.f32.mxu0 %vm928_vm11, %v906_v44 }
 0x201   : > { %v763_v56 = vpop.permute.xlu1 %762 }
 0x202   : > { %v915_v49 = vsel %vm899_vm10, %v898_v51, %v763_v56  ;;  %v747_v63 = vpop.permute.xlu0 %746 }
 0x203   : > { %v907_v1 = vsel %vm899_vm10, %v890_v42, %v747_v63  ;;  %1375 = vmatmul.mubr.msk.f32.gmra.mrb[6].mxu1 %vm928_vm11, %v915_v49 }
 0x204   : > { %1363 = vmatmul.mubr.msk.f32.gmra.mrb[6].mxu0 %vm928_vm11, %v907_v1 }
 0x23e   : > { %v1367_v3 = vpop.f32.mrb[0].mxu1 }
 0x23f   : > { %v1355_v10 = vpop.f32.mrb[0].mxu0  ;;  %v1093_v4 = vadd.f32 %v1367_v3, %v2640_v2  ;;  %v1087_v8 = vpop.f32.mrb[1].mxu1 }
 0x240   : > { %v1053_v9 = vadd.f32 %v1355_v10, %v2640_v2  ;;  %v1047_v22 = vpop.f32.mrb[1].mxu0  ;;  %v1088_v23 = vadd.f32 %v2640_v2, %v1087_v8 }
 0x241   : > { %v1135_v37 = vmax.f32 %v1093_v4, 0.0  ;;  %v1048_v39 = vadd.f32 %v2640_v2, %v1047_v22 }
 0x242   : > { %v1127_v13 = vmax.f32 %v1053_v9, 0.0  ;;  %v1134_v16 = vmax.f32 %v1088_v23, 0.0 }
 0x243   : > { %1151 = vst [vmem:[%s2648_s1 + $0x48] sm:$0xff] %v1135_v37  ;;  %v1126_v40 = vmax.f32 %v1048_v39, 0.0 }
 0x244   : > { %1143 = vst [vmem:[%s2648_s1 + $0x8] sm:$0xff] %v1127_v13  ;;  %1150 = vst [vmem:[%s2648_s1 + $0x40] sm:$0xff] %v1134_v16 }
 0x245   : > { %1142 = vst [vmem:[%s2648_s1] sm:$0xff] %v1126_v40 }
 0x27e   : > { %v1358_v50 = vpop.f32.mrb[2].mxu0  ;;  %v1370_v34 = vpop.f32.mrb[2].mxu1 }
 0x27f   : > { %v1063_v55 = vadd.f32 %v1358_v50, %v2640_v2  ;;  %v1103_v6 = vadd.f32 %v1370_v34, %v2640_v2  ;;  %v1057_v38 = vpop.f32.mrb[3].mxu0  ;;  %v1097_v52 = vpop.f32.mrb[3].mxu1 }
 0x280   : > { %v1058_v53 = vadd.f32 %v2640_v2, %v1057_v38  ;;  %v1098_v41 = vadd.f32 %v2640_v2, %v1097_v52 }
 0x281   : > { %v1129_v59 = vmax.f32 %v1063_v55, 0.0  ;;  %v1137_v5 = vmax.f32 %v1103_v6, 0.0 }
 0x282   : > { %v1128_v7 = vmax.f32 %v1058_v53, 0.0  ;;  %v1136_v25 = vmax.f32 %v1098_v41, 0.0 }
 0x283   : > { %1145 = vst [vmem:[%s2648_s1 + $0x18] sm:$0xff] %v1129_v59  ;;  %1153 = vst [vmem:[%s2648_s1 + $0x58] sm:$0xff] %v1137_v5 }
 0x284   : > { %1144 = vst [vmem:[%s2648_s1 + $0x10] sm:$0xff] %v1128_v7  ;;  %1152 = vst [vmem:[%s2648_s1 + $0x50] sm:$0xff] %v1136_v25 }
 0x2ba   : > { %v1373_v14 = vpop.f32.mrb[4].mxu1 }
 0x2bb   : > { %v1361_v30 = vpop.f32.mrb[4].mxu0  ;;  %v1113_v57 = vadd.f32 %v1373_v14, %v2640_v2  ;;  %v1107_v58 = vpop.f32.mrb[5].mxu1 }
 0x2bc   : > { %v1073_v61 = vadd.f32 %v1361_v30, %v2640_v2  ;;  %v1067_v62 = vpop.f32.mrb[5].mxu0  ;;  %v1108_v24 = vadd.f32 %v2640_v2, %v1107_v58 }
 0x2bd   : > { %v1139_v20 = vmax.f32 %v1113_v57, 0.0  ;;  %v1068_v60 = vadd.f32 %v2640_v2, %v1067_v62 }
 0x2be   : > { %v1131_v19 = vmax.f32 %v1073_v61, 0.0  ;;  %v1138_v21 = vmax.f32 %v1108_v24, 0.0 }
 0x2bf   : > { %1155 = vst [vmem:[%s2648_s1 + $0x68] sm:$0xff] %v1139_v20  ;;  %v1130_v26 = vmax.f32 %v1068_v60, 0.0 }
 0x2c0   : > { %1147 = vst [vmem:[%s2648_s1 + $0x28] sm:$0xff] %v1131_v19  ;;  %1154 = vst [vmem:[%s2648_s1 + $0x60] sm:$0xff] %v1138_v21 }
 0x2c1   : > { %1146 = vst [vmem:[%s2648_s1 + $0x20] sm:$0xff] %v1130_v26 }
 0x2d6   : > { %v1376_v15 = vpop.f32.mrb[6].mxu1 }
 0x2d7   : > { %v1364_v18 = vpop.f32.mrb[6].mxu0  ;;  %v1123_v27 = vadd.f32 %v1376_v15, %v2640_v2  ;;  %v1117_v33 = vpop.f32.mrb[7].mxu1 }
 0x2d8   : > { %v1083_v54 = vadd.f32 %v1364_v18, %v2640_v2  ;;  %v1077_v35 = vpop.f32.mrb[7].mxu0  ;;  %v1118_v31 = vadd.f32 %v2640_v2, %v1117_v33 }
 0x2d9   : > { %v1141_v11 = vmax.f32 %v1123_v27, 0.0  ;;  %v1078_v45 = vadd.f32 %v2640_v2, %v1077_v35 }
 0x2da   : > { %v1133_v28 = vmax.f32 %v1083_v54, 0.0  ;;  %v1140_v48 = vmax.f32 %v1118_v31, 0.0 }
 0x2db   : > { %1157 = vst [vmem:[%s2648_s1 + $0x78] sm:$0xff] %v1141_v11  ;;  %v1132_v17 = vmax.f32 %v1078_v45, 0.0 }
 0x2dc   : > { %1149 = vst [vmem:[%s2648_s1 + $0x38] sm:$0xff] %v1133_v28  ;;  %1156 = vst [vmem:[%s2648_s1 + $0x70] sm:$0xff] %v1140_v48 }
 0x2dd   : > { %1148 = vst [vmem:[%s2648_s1 + $0x30] sm:$0xff] %v1132_v17 }
 0x2de   : > { %1627 = shalt.err (!%p1624_p5)
}
 0x2df   : > { %s1628_s7 = scalar_lea.hbm %s2680_s30, 2048  ;;  %s1632_s9 = scalar_lea.hbm %s2755_s3, 8192 }
 0x2e0   : > { %p1629_p8 = scmp.ne.s32.totalorder %s2680_s30, %s1628_s7  ;;  %p1633_p6 = scmp.lt.u32.totalorder %s2680_s30, %s2755_s3 }
 0x2e1   : > { %p1634_p10 = scmp.lt.u32.totalorder %s1632_s9, %s1628_s7  ;;  %p1636_p4 = scmp.lt.u32.totalorder %s1628_s7, %s2680_s30 }
 0x2e2   : > { %p1630_p12 = pnand %p1629_p8, %p2816_p3 }
 0x2e3   : > { %p1635_p1 = por %p1634_p10, %p1633_p6 }
 0x2e4   : > { %p1631_p2 = pneg %p1630_p12 }
 0x2e5   : > { %p1637_p7 = por %p1636_p4, %p1635_p1 }
 0x2e7   : > { %p1638_p13 = pnand %p1637_p7, %p1631_p2 }
 0x2e9   : > { %1641 = shalt.err (!%p1638_p13)
}
 0x2ea   : > { %s1756_s6 = smov 128  }
 0x2eb   : > { %1404 = dma.vmem_to_hbm [thread:$0]  (%p2816_p3), %s2683_s18, 2048, %s2680_s30, %s2690_s25, %s1756_s6, %s1756_s6, %s1748_s27  }
 0x2ec PF: > { %s2817_s23 = sld [smem:[#allocation12_spill]]  ;;  %s2818_s4 = sld [smem:[#allocation14_spill]] }
 0x2ed   : > { %p1426_p9 = scmp.ge.s32.totalorder %s1740_s22, 2 }
 0x2f2   : > { %s1190_s19 = sand.u32 1, %s2817_s23   ;;  %p2819_p11 = scmp.ne.s32.totalorder %s2818_s4, 0 }
 0x2f3   : > { %s1191_s20 = scalar_lea.sflag [#allocation4], %s1190_s19 }
 0x2f4   : > { %p1418_p0 = pnand %p1426_p9, %p2819_p11 }
 0x2f6   : > { %1695 = dma.done.wait (!%p1418_p0), %s1191_s20, 2048  }
 0x2f7   : > { %1697 = vsyncadd (!%p1418_p0), %s1191_s20, 4294965248  ;;  %s20_s22 = sadd.s32 1, %s1740_s22   ;;  %s2820_s18 = sld [smem:[#allocation13_spill]] }
 0x2f8   : > { %p17_p5 = scmp.ge.s32.totalorder %s20_s22, 6   ;;  %s2821_s20 = sld [smem:[#allocation15_spill]] }
 0x2f9   : > { %s2822_s28 = smov %s2836_s15  ;;  %s2823_s12 = smov %s1704_s13 }
 0x2fa   : > { %s2824_s13 = smov %s1708_s14  ;;  %s2825_s14 = smov %s1956_s2 }
 0x2fb   : > { %s2826_s15 = smov %s1716_s16  ;;  %s2827_s16 = smov %s1720_s17 }
 0x2fc   : > { %s2828_s17 = smov %s1951_s10  ;;  %s2829_s19 = smov %s1736_s21 }
 0x2fd   : > { %s2830_s21 = smov %s2822_s28  ;;  %19 = sbr.rel (!%p17_p5) target bundleno = 13 (0xd), region = 86 }
 0x304   :  { %1196 = vsyncpa [#allocation3], 1 }
 0x305   :  { %1198 = vsyncpa [#allocation3 + $0x1], 1 }
 0x306   :  { %1199 = vsyncpa [#allocation6], 1 }
 0x307   :  { %1200 = vsyncpa [#allocation4], 1 }
 0x308   :  { %1202 = vsyncpa [#allocation4 + $0x1], 1 }

</bundles_post_ra>
